<compile_context>
chip_gen: v5e
topology: v5e:2x2
jax: 0.10.0
libtpu: 0.0.40
codegen_flags: <defaults>
</compile_context>

<pallas_src>
import jax
import jax.numpy as jnp
from jax.experimental import pallas as pl
from jax.experimental.pallas import tpu as pltpu

# Target per-block footprint in bytes.  Input + output are each double
# buffered -> ~4x this resident in VMEM; 2 MiB keeps us inside the default
# scoped-VMEM budget on every generation (v5e 16 MiB, v6e/v7x 32 MiB) while
# staying in the 85%+ of-HBM-roofline regime for a memory-bound copy.
_TARGET_BLOCK_BYTES = 2 * 1024 * 1024


def _copy_kernel(x_ref, o_ref):
    # Identity: copy the current VMEM tile input -> output.
    o_ref[...] = x_ref[...]


def _choose_lane_dim(total: int) -> int:
    # Largest lane width (multiple of 128) dividing the element count, so the
    # output last dim is lane-dense (full unmasked vst, full DMA burst width).
    for cand in (2048, 1024, 512, 256, 128):
        if total % cand == 0:
            return cand
    return 0


def dense_block_forward(x: jax.Array) -> jax.Array:
    """Identity forward pass of DenseBlock as an optimized Pallas TPU copy."""
    orig_shape = x.shape
    total = x.size
    itemsize = jnp.dtype(x.dtype).itemsize

    lane = _choose_lane_dim(total)
    if lane == 0:
        # Fallback: trailing dim kept as a full-extent block (always legal).
        lane = orig_shape[-1]
    rows = total // lane
    x2d = x.reshape(rows, lane)

    # Largest row tile (multiple of 8) whose block fits the per-block budget.
    max_rows_for_budget = max(8, _TARGET_BLOCK_BYTES // (lane * itemsize))
    tile_rows = min(rows, (max_rows_for_budget // 8) * 8)
    # v7x has 2 TensorCores: keep >= 2 parallel grid steps when rows allow it
    # so the grid axis can be sharded across cores (no effect on v5e/v6e).
    if tile_rows == rows and rows >= 16:
        tile_rows = max(8, (rows // 2 // 8) * 8)

    grid = (pl.cdiv(rows, tile_rows),)

    out2d = pl.pallas_call(
        _copy_kernel,
        out_shape=jax.ShapeDtypeStruct((rows, lane), x.dtype),
        grid=grid,
        in_specs=[pl.BlockSpec((tile_rows, lane), lambda i: (i, 0))],
        out_specs=pl.BlockSpec((tile_rows, lane), lambda i: (i, 0)),
        input_output_aliases={0: 0},
        compiler_params=pltpu.CompilerParams(
            dimension_semantics=("parallel",)
        ),
    )(x2d)

    return out2d.reshape(orig_shape)


if __name__ == "__main__":
    key = jax.random.PRNGKey(0)
    x = jax.random.normal(key, (2, 4, 16, 16), dtype=jnp.float32)

    fwd = jax.jit(dense_block_forward)
    y = fwd(x)
    jax.block_until_ready(y)

    assert y.shape == x.shape
    assert y.dtype == x.dtype
    assert bool(jnp.allclose(y, x)), "identity forward mismatch"

    print("KERNEL_OK")
</pallas_src>

<mosaic_0001>
module attributes {stable_mosaic.version = 11 : i64} {
  func.func @_copy_kernel(%arg0: i32, %arg1: memref<1x2048xf32, #tpu.memory_space<vmem>>, %arg2: memref<1x2048xf32, #tpu.memory_space<vmem>>) attributes {dimension_semantics = [#tpu.dimension_semantics<parallel>], iteration_bounds = array<i64: 1>, scalar_prefetch = 0 : i64, scratch_operands = 0 : i64, tpu.core_type = #tpu.core_type<tc>, window_params = [{transform_indices = @transform_0, window_bounds = array<i64: 1, 2048>}, {transform_indices = @transform_1, window_bounds = array<i64: 1, 2048>}]} {
    %c0 = arith.constant 0 : index
    %c0_0 = arith.constant 0 : index
    %0 = vector.load %arg1[%c0, %c0_0] : memref<1x2048xf32, #tpu.memory_space<vmem>>, vector<1x2048xf32>
    %c0_1 = arith.constant 0 : index
    %c0_2 = arith.constant 0 : index
    %1 = vector.load %arg2[%c0_1, %c0_2] : memref<1x2048xf32, #tpu.memory_space<vmem>>, vector<1x2048xf32>
    tpu.vector_store %arg2[%c0_1, %c0_2], %0 {strides = array<i32>} : memref<1x2048xf32, #tpu.memory_space<vmem>>, vector<1x2048xf32>,
    return
  }
  func.func @transform_0(%arg0: i32) -> (i32, i32) {
    %c0_i32 = arith.constant 0 : i32
    %c0_i32_0 = arith.constant 0 : i32
    return %arg0, %c0_i32 : i32, i32
  }
  func.func @transform_1(%arg0: i32) -> (i32, i32) {
    %c0_i32 = arith.constant 0 : i32
    %c0_i32_0 = arith.constant 0 : i32
    return %arg0, %c0_i32 : i32, i32
  }
}

</mosaic_0001>

<bundles_post_ra>
// kernel: dense_block_forward.1
= control target key start
LH: loop header
LB: loop body
LE: loop exit
PB: predicated region body
PF: predicated region fallthrough
CT: control target
= control target key end

     0   :  { %s38_s0 = inlined_call_operand.vmem [shape: f32[1,2048], index: 0, kind: input, shape index: {}, may-alias: {0,1}]   ;;  %s39_s1 = inlined_call_operand.vmem [shape: f32[1,2048], index: 1, kind: output, shape index: {}, may-alias: {0,1}]  }
   0x1   :  { %v8_v0 = vld [vmem:[%s38_s0] sm:$0xff]  ;;  %v9_v1 = vld [vmem:[%s38_s0 + $0x8] sm:$0xff] }
   0x2   :  { %10 = vst [vmem:[%s39_s1] sm:$0xff] %v8_v0 }
   0x3   :  { %11 = vst [vmem:[%s39_s1 + $0x8] sm:$0xff] %v9_v1 }

</bundles_post_ra>
